<compile_context>
chip_gen: v6e
topology: v6e:2x2x1
jax: 0.10.0
libtpu: 0.0.40
codegen_flags: <defaults>
</compile_context>

<pallas_src>
import functools
import math

import jax
import jax.numpy as jnp
from jax import lax
from jax.experimental import pallas as pl
from jax.experimental.pallas import tpu as pltpu

EPS = 1e-5


def _round_up(x, m):
    return (x + m - 1) // m * m


def bn2_stats_kernel(x_ref, s1_ref, t1_ref, w1_ref, sum_ref, sq_ref):
    """Per image tile: y = relu(bn1(x)) @ W1; accumulate sum / sumsq of y."""
    @pl.when(pl.program_id(0) == 0)
    def _():
        sum_ref[...] = jnp.zeros_like(sum_ref)
        sq_ref[...] = jnp.zeros_like(sq_ref)

    z1 = jnp.maximum(x_ref[...] * s1_ref[...] + t1_ref[...], 0.0)
    y = jnp.dot(z1, w1_ref[...], preferred_element_type=jnp.float32)
    sum_ref[...] += jnp.sum(y, axis=0, keepdims=True)
    sq_ref[...] += jnp.sum(y * y, axis=0, keepdims=True)


def bottleneck_main_kernel(x_ref, s1_ref, t1_ref, w1_ref, s2_ref, t2_ref,
                           w2_ref, out_ref, pad_ref, *, h, w, cin, cmid, g):
    hw = h * w
    x = x_ref[...]                                        # (HW, Cin)

    # BN1+ReLU (pre-fused scale/shift), 1x1 conv on the MXU, BN2+ReLU.
    z1 = jnp.maximum(x * s1_ref[...] + t1_ref[...], 0.0)
    y = jnp.dot(z1, w1_ref[...], preferred_element_type=jnp.float32)
    z2 = jnp.maximum(y * s2_ref[...] + t2_ref[...], 0.0)  # (HW, Cmid)

    # Zero-padded activation for the 3x3 conv: one full aligned memset of the
    # (sublane-padded) scratch, then a single interior store.
    pad_ref[...] = jnp.zeros_like(pad_ref)
    pad_ref[1:h + 1, 1:w + 1, :] = z2.reshape(h, w, cmid)

    # 3x3 conv = 9 accumulated K=Cmid dots (no im2col slab).
    acc = jnp.zeros((hw, g), jnp.float32)
    for dy in range(3):
        for dx in range(3):
            win = pad_ref[dy:dy + h, dx:dx + w, :].reshape(hw, cmid)
            k0 = (3 * dy + dx) * cmid
            acc = acc + jnp.dot(win, w2_ref[k0:k0 + cmid, :],
                                preferred_element_type=jnp.float32)

    # Fused channel concat via two sub-slice stores (no lane concatenate).
    out_ref[:, 0:g] = acc.astype(out_ref.dtype)
    out_ref[:, g:g + cin] = x.astype(out_ref.dtype)


def bottleneck_blk(x_nchw, params):
    n, cin, h, w = x_nchw.shape
    g = params["conv2_w"].shape[0]
    cmid = 4 * g
    assert params["conv1_w"].shape == (cmid, cin, 1, 1)
    assert params["conv2_w"].shape == (g, cmid, 3, 3)
    m = n * h * w
    hw = h * w
    cout = g + cin
    w_pad = _round_up(w + 2, 8)

    # NCHW -> NHWC only at the module boundary (kernel is channels-last).
    x_nhwc = jnp.transpose(x_nchw, (0, 2, 3, 1)).astype(jnp.float32)
    x2d = x_nhwc.reshape(m, cin)

    w1t = params["conv1_w"].reshape(cmid, cin).T.astype(jnp.float32)     # (Cin, Cmid)
    # conv2 weight (G, Cmid, 3, 3) -> (9*Cmid, G); row = (3*dy+dx)*Cmid + c.
    w2c = jnp.transpose(params["conv2_w"], (2, 3, 1, 0)) \
             .reshape(9 * cmid, g).astype(jnp.float32)

    # ---- BN1 (train mode, biased var) hoisted: tiny XLA reduce over x. ----
    g1 = params["bn1_gamma"].reshape(1, cin).astype(jnp.float32)
    b1 = params["bn1_beta"].reshape(1, cin).astype(jnp.float32)
    mean1 = jnp.mean(x2d, axis=0, keepdims=True)
    var1 = jnp.mean((x2d - mean1) ** 2, axis=0, keepdims=True)
    s1 = g1 * lax.rsqrt(var1 + EPS)
    t1 = b1 - mean1 * s1

    # ---- BN2 stats via a small pre-pass pallas_call. ----
    stats_cost = pl.CostEstimate(
        flops=2 * m * cin * cmid + 4 * m * cmid,
        transcendentals=0,
        bytes_accessed=4 * (m * cin + cin * cmid + 2 * cmid))
    sum2, sq2 = pl.pallas_call(
        bn2_stats_kernel,
        out_shape=(jax.ShapeDtypeStruct((1, cmid), jnp.float32),
                   jax.ShapeDtypeStruct((1, cmid), jnp.float32)),
        grid=(n,),
        in_specs=[
            pl.BlockSpec((hw, cin), lambda i: (i, 0)),
            pl.BlockSpec((1, cin), lambda i: (0, 0)),
            pl.BlockSpec((1, cin), lambda i: (0, 0)),
            pl.BlockSpec((cin, cmid), lambda i: (0, 0)),
        ],
        out_specs=(pl.BlockSpec((1, cmid), lambda i: (0, 0)),
                   pl.BlockSpec((1, cmid), lambda i: (0, 0))),
        compiler_params=pltpu.CompilerParams(
            dimension_semantics=("arbitrary",),
            vmem_limit_bytes=32 * 1024 * 1024),
        cost_estimate=stats_cost,
    )(x2d, s1, t1, w1t)

    g2 = params["bn2_gamma"].reshape(1, cmid).astype(jnp.float32)
    b2 = params["bn2_beta"].reshape(1, cmid).astype(jnp.float32)
    mean2 = sum2 / m
    var2 = jnp.maximum(sq2 / m - mean2 * mean2, 0.0)   # clamp: no negative var
    s2 = g2 * lax.rsqrt(var2 + EPS)
    t2 = b2 - mean2 * s2

    # ---- Main fused kernel, tiled over images, "parallel" for megacore. ----
    kernel = functools.partial(bottleneck_main_kernel, h=h, w=w,
                               cin=cin, cmid=cmid, g=g)
    main_cost = pl.CostEstimate(
        flops=2 * m * (cin * cmid + 9 * cmid * g),
        transcendentals=0,
        bytes_accessed=4 * (m * cin + m * cout + cin * cmid + 9 * cmid * g))

    out2d = pl.pallas_call(
        kernel,
        out_shape=jax.ShapeDtypeStruct((m, cout), jnp.float32),
        grid=(n,),
        in_specs=[
            pl.BlockSpec((hw, cin), lambda i: (i, 0)),
            pl.BlockSpec((1, cin), lambda i: (0, 0)),
            pl.BlockSpec((1, cin), lambda i: (0, 0)),
            pl.BlockSpec((cin, cmid), lambda i: (0, 0)),
            pl.BlockSpec((1, cmid), lambda i: (0, 0)),
            pl.BlockSpec((1, cmid), lambda i: (0, 0)),
            pl.BlockSpec((9 * cmid, g), lambda i: (0, 0)),
        ],
        out_specs=pl.BlockSpec((hw, cout), lambda i: (i, 0)),
        scratch_shapes=[pltpu.VMEM((h + 2, w_pad, cmid), jnp.float32)],
        compiler_params=pltpu.CompilerParams(
            dimension_semantics=("parallel",),
            vmem_limit_bytes=32 * 1024 * 1024),
        cost_estimate=main_cost,
    )(x2d, s1, t1, w1t, s2, t2, w2c)

    out_nhwc = out2d.reshape(n, h, w, cout)
    return jnp.transpose(out_nhwc, (0, 3, 1, 2))      # back to NCHW


def reference(x, params):
    """Pure-JAX reference mirroring the PyTorch forward (train-mode BN)."""
    def bn(t, gamma, beta):
        mean = jnp.mean(t, axis=(0, 2, 3), keepdims=True)
        var = jnp.mean((t - mean) ** 2, axis=(0, 2, 3), keepdims=True)
        return (t - mean) / jnp.sqrt(var + EPS) * gamma.reshape(1, -1, 1, 1) \
            + beta.reshape(1, -1, 1, 1)

    z1 = jnp.maximum(bn(x, params["bn1_gamma"], params["bn1_beta"]), 0.0)
    y = lax.conv_general_dilated(z1, params["conv1_w"], (1, 1), "VALID",
                                 dimension_numbers=("NCHW", "OIHW", "NCHW"))
    z2 = jnp.maximum(bn(y, params["bn2_gamma"], params["bn2_beta"]), 0.0)
    c2 = lax.conv_general_dilated(z2, params["conv2_w"], (1, 1),
                                  ((1, 1), (1, 1)),
                                  dimension_numbers=("NCHW", "OIHW", "NCHW"))
    # torch: block = cat([conv2_out, inputs], 1)
    return jnp.concatenate([c2, x], axis=1)


if __name__ == "__main__":
    key = jax.random.PRNGKey(0)
    n, in_chn, h, w = 2, 4, 16, 16
    growth_rate = 8
    cmid = 4 * growth_rate

    k1, k2, k3 = jax.random.split(key, 3)
    x = jax.random.normal(k1, (n, in_chn, h, w), dtype=jnp.float32)

    params = {
        "bn1_gamma": jnp.ones((in_chn,), jnp.float32),
        "bn1_beta": jnp.zeros((in_chn,), jnp.float32),
        "conv1_w": jax.random.normal(k2, (cmid, in_chn, 1, 1), jnp.float32)
        * (1.0 / math.sqrt(in_chn)),
        "bn2_gamma": jnp.ones((cmid,), jnp.float32),
        "bn2_beta": jnp.zeros((cmid,), jnp.float32),
        "conv2_w": jax.random.normal(k3, (growth_rate, cmid, 3, 3), jnp.float32)
        * (1.0 / math.sqrt(9 * cmid)),
    }

    out = jax.block_until_ready(bottleneck_blk(x, params))
    ref = reference(x, params)

    assert out.shape == (n, growth_rate + in_chn, h, w), out.shape
    max_err = float(jnp.max(jnp.abs(out - ref)))
    assert jnp.allclose(out, ref, rtol=1e-4, atol=1e-4), max_err
    print("KERNEL_OK")
</pallas_src>

<mosaic_0001>
module attributes {stable_mosaic.version = 11 : i64} {
  func.func @bn2_stats_kernel(%arg0: i32, %arg1: memref<256x4xf32, #tpu.memory_space<vmem>>, %arg2: memref<1x4xf32, #tpu.memory_space<vmem>>, %arg3: memref<1x4xf32, #tpu.memory_space<vmem>>, %arg4: memref<4x32xf32, #tpu.memory_space<vmem>>, %arg5: memref<1x32xf32, #tpu.memory_space<vmem>>, %arg6: memref<1x32xf32, #tpu.memory_space<vmem>>) attributes {dimension_semantics = [#tpu.dimension_semantics<arbitrary>], iteration_bounds = array<i64: 2>, scalar_prefetch = 0 : i64, scratch_operands = 0 : i64, tpu.core_type = #tpu.core_type<tc>, window_params = [{transform_indices = @transform_0, window_bounds = array<i64: 256, 4>}, {pipeline_mode = #tpu.pipeline_mode<synchronous>, transform_indices = @transform_1, window_bounds = array<i64: 1, 4>}, {pipeline_mode = #tpu.pipeline_mode<synchronous>, transform_indices = @transform_2, window_bounds = array<i64: 1, 4>}, {pipeline_mode = #tpu.pipeline_mode<synchronous>, transform_indices = @transform_3, window_bounds = array<i64: 4, 32>}, {pipeline_mode = #tpu.pipeline_mode<synchronous>, transform_indices = @transform_4, window_bounds = array<i64: 1, 32>}, {pipeline_mode = #tpu.pipeline_mode<synchronous>, transform_indices = @transform_5, window_bounds = array<i64: 1, 32>}]} {
    %c0_i32 = arith.constant 0 : i32
    %0 = arith.cmpi eq, %arg0, %c0_i32 : i32
    %1 = arith.extui %0 : i1 to i32
    %c0_i32_0 = arith.constant 0 : i32
    %2 = arith.cmpi ne, %1, %c0_i32_0 : i32
    scf.if %2 {
      %cst_19 = arith.constant 0.000000e+00 : f32
      %25 = vector.broadcast %cst_19 : f32 to vector<1x32xf32>
      %c0_20 = arith.constant 0 : index
      %c0_21 = arith.constant 0 : index
      %26 = vector.load %arg5[%c0_20, %c0_21] : memref<1x32xf32, #tpu.memory_space<vmem>>, vector<1x32xf32>
      tpu.vector_store %arg5[%c0_20, %c0_21], %25 {strides = array<i32>} : memref<1x32xf32, #tpu.memory_space<vmem>>, vector<1x32xf32>,
      %cst_22 = arith.constant 0.000000e+00 : f32
      %27 = vector.broadcast %cst_22 : f32 to vector<1x32xf32>
      %c0_23 = arith.constant 0 : index
      %c0_24 = arith.constant 0 : index
      %28 = vector.load %arg6[%c0_23, %c0_24] : memref<1x32xf32, #tpu.memory_space<vmem>>, vector<1x32xf32>
      tpu.vector_store %arg6[%c0_23, %c0_24], %27 {strides = array<i32>} : memref<1x32xf32, #tpu.memory_space<vmem>>, vector<1x32xf32>,
    } else {
    }
    %c0 = arith.constant 0 : index
    %c0_1 = arith.constant 0 : index
    %3 = vector.load %arg1[%c0, %c0_1] : memref<256x4xf32, #tpu.memory_space<vmem>>, vector<256x4xf32>
    %c0_2 = arith.constant 0 : index
    %c0_3 = arith.constant 0 : index
    %4 = vector.load %arg2[%c0_2, %c0_3] : memref<1x4xf32, #tpu.memory_space<vmem>>, vector<1x4xf32>
    %5 = vector.broadcast %4 : vector<1x4xf32> to vector<256x4xf32>
    %6 = arith.mulf %3, %5 : vector<256x4xf32>
    %c0_4 = arith.constant 0 : index
    %c0_5 = arith.constant 0 : index
    %7 = vector.load %arg3[%c0_4, %c0_5] : memref<1x4xf32, #tpu.memory_space<vmem>>, vector<1x4xf32>
    %8 = vector.broadcast %7 : vector<1x4xf32> to vector<256x4xf32>
    %9 = arith.addf %6, %8 : vector<256x4xf32>
    %cst = arith.constant 0.000000e+00 : f32
    %10 = vector.broadcast %cst : f32 to vector<256x4xf32>
    %11 = arith.maximumf %9, %10 : vector<256x4xf32>
    %c0_6 = arith.constant 0 : index
    %c0_7 = arith.constant 0 : index
    %12 = vector.load %arg4[%c0_6, %c0_7] : memref<4x32xf32, #tpu.memory_space<vmem>>, vector<4x32xf32>
    %cst_8 = arith.constant dense<0.000000e+00> : vector<256x32xf32>
    %13 = tpu.matmul %11, %12, %cst_8 {dimension_numbers = #tpu.dot_dimension_numbers<[1], [0], [0], [1], [0, 0, 1, 1], [], []>} : vector<256x4xf32>, vector<4x32xf32>, vector<256x32xf32> -> vector<256x32xf32>
    %c0_9 = arith.constant 0 : index
    %c0_10 = arith.constant 0 : index
    %14 = vector.load %arg5[%c0_9, %c0_10] : memref<1x32xf32, #tpu.memory_space<vmem>>, vector<1x32xf32>
    %cst_11 = arith.constant dense<0.000000e+00> : vector<32xf32>
    %15 = vector.multi_reduction <add>, %13, %cst_11 [0] : vector<256x32xf32> to vector<32xf32>
    %16 = vector.shape_cast %15 : vector<32xf32> to vector<1x32xf32>
    %17 = arith.addf %14, %16 : vector<1x32xf32>
    %c0_12 = arith.constant 0 : index
    %c0_13 = arith.constant 0 : index
    %18 = vector.load %arg5[%c0_12, %c0_13] : memref<1x32xf32, #tpu.memory_space<vmem>>, vector<1x32xf32>
    tpu.vector_store %arg5[%c0_12, %c0_13], %17 {strides = array<i32>} : memref<1x32xf32, #tpu.memory_space<vmem>>, vector<1x32xf32>,
    %c0_14 = arith.constant 0 : index
    %c0_15 = arith.constant 0 : index
    %19 = vector.load %arg6[%c0_14, %c0_15] : memref<1x32xf32, #tpu.memory_space<vmem>>, vector<1x32xf32>
    %20 = arith.mulf %13, %13 : vector<256x32xf32>
    %cst_16 = arith.constant dense<0.000000e+00> : vector<32xf32>
    %21 = vector.multi_reduction <add>, %20, %cst_16 [0] : vector<256x32xf32> to vector<32xf32>
    %22 = vector.shape_cast %21 : vector<32xf32> to vector<1x32xf32>
    %23 = arith.addf %19, %22 : vector<1x32xf32>
    %c0_17 = arith.constant 0 : index
    %c0_18 = arith.constant 0 : index
    %24 = vector.load %arg6[%c0_17, %c0_18] : memref<1x32xf32, #tpu.memory_space<vmem>>, vector<1x32xf32>
    tpu.vector_store %arg6[%c0_17, %c0_18], %23 {strides = array<i32>} : memref<1x32xf32, #tpu.memory_space<vmem>>, vector<1x32xf32>,
    return
  }
  func.func @transform_0(%arg0: i32) -> (i32, i32) {
    %c0_i32 = arith.constant 0 : i32
    %c0_i32_0 = arith.constant 0 : i32
    return %arg0, %c0_i32 : i32, i32
  }
  func.func @transform_1(%arg0: i32) -> (i32, i32) {
    %c0_i32 = arith.constant 0 : i32
    %c0_i32_0 = arith.constant 0 : i32
    %c0_i32_1 = arith.constant 0 : i32
    return %c0_i32, %c0_i32_0 : i32, i32
  }
  func.func @transform_2(%arg0: i32) -> (i32, i32) {
    %c0_i32 = arith.constant 0 : i32
    %c0_i32_0 = arith.constant 0 : i32
    %c0_i32_1 = arith.constant 0 : i32
    return %c0_i32, %c0_i32_0 : i32, i32
  }
  func.func @transform_3(%arg0: i32) -> (i32, i32) {
    %c0_i32 = arith.constant 0 : i32
    %c0_i32_0 = arith.constant 0 : i32
    %c0_i32_1 = arith.constant 0 : i32
    return %c0_i32, %c0_i32_0 : i32, i32
  }
  func.func @transform_4(%arg0: i32) -> (i32, i32) {
    %c0_i32 = arith.constant 0 : i32
    %c0_i32_0 = arith.constant 0 : i32
    %c0_i32_1 = arith.constant 0 : i32
    return %c0_i32, %c0_i32_0 : i32, i32
  }
  func.func @transform_5(%arg0: i32) -> (i32, i32) {
    %c0_i32 = arith.constant 0 : i32
    %c0_i32_0 = arith.constant 0 : i32
    %c0_i32_1 = arith.constant 0 : i32
    return %c0_i32, %c0_i32_0 : i32, i32
  }
}

</mosaic_0001>

<bundles_post_ra>
// kernel: tpu_custom_call.1
= control target key start
LH: loop header
LB: loop body
LE: loop exit
PB: predicated region body
PF: predicated region fallthrough
CT: control target
= control target key end

     0   :  { %11 = vsyncpa [#allocation3], 0  ;;  %s1472_s0 = inlined_call_operand.vmem [shape: f32[512,4], index: 0, kind: input, shape index: {}]   ;;  %s1473_s1 = inlined_call_operand.vmem [shape: f32[1,4], index: 1, kind: input, shape index: {}]   ;;  %s1474_s2 = inlined_call_operand.vmem [shape: f32[1,4], index: 2, kind: input, shape index: {}]   ;;  %s1475_s3 = inlined_call_operand.vmem [shape: f32[4,32], index: 3, kind: input, shape index: {}]   ;;  %s1476_s4 = inlined_call_operand.hbm [shape: f32[1,32], index: 4, kind: output, shape index: {0}]   ;;  %s1477_s5 = inlined_call_operand.hbm [shape: f32[1,32], index: 5, kind: output, shape index: {1}]  }
   0x1   :  { %12 = vsyncpa [#allocation5], 0  ;;  %s1187_s18 = smov 0  }
   0x2 LB: > { %s1193_s19 = sadd.s32 4294967295, %s1152_s18   ;;  %p937_p0 = scmp.ge.s32.totalorder %s1152_s18, 1  ;;  %s1152_s18 = sphi %s1187_s18, %s18_s18  }
   0x3   : > { %p183_p1 = scmp.lt.s32.totalorder %s1152_s18, 3 }
   0x5   : > { %p184_p2 = pnand %p937_p0, %p183_p1 }
   0x6   : > { %s938_s20 = sshll.u32 (!%p184_p2), %s1193_s19, 5  ;;  %p940_p4 = scmp.ne.s32.totalorder (!%p184_p2), %s1193_s19, 0 }
   0x7   : > { %187 = sbr.rel (%p184_p2) target bundleno = 321 (0x141), region = 36  ;;  %p207_p3 = scmp.lt.s32.totalorder (!%p184_p2), %s938_s20, 63 }
   0xc   : > { %s1479_s20 = smov (!%p207_p3, %s938_s20), 63  ;;  %215 = sbr.rel (%p940_p4) target bundleno = 19 (0x13), region = 40 }
   0xd   : > { %s939_s21 = sshll.u32 %s1479_s20, 3 }
   0xe   : > { %s1201_s24 = scalar_lea.vmem %s1472_s0, %s939_s21 }
  0x11   : > { %vm216_vm0 = vcmask 253952   ;;  %v1154_v0 = vmov 0.0  }
  0x12   : > { %217 = vst.msk [vmem:[#allocation2] sm:$0x1] %vm216_vm0, %v1154_v0  ;;  %218 = vst.msk [vmem:[#allocation4] sm:$0x1] %vm216_vm0, %v1154_v0 }
  0x13 PF: > { %v361_v1 = vld [vmem:[%s1475_s3] sm:$0xf]  ;;  %vm459_vm1 = vcmask 1043456   ;;  %v220_v6 = vld [vmem:[%s1201_s24 + $0x8] sm:$0xff]  ;;  %v221_v7 = vld [vmem:[%s1201_s24 + $0x10] sm:$0xff]  ;;  %vm362_vm2 = vcmask 31744  }
  0x14   : > { %v219_v2 = vld [vmem:[%s1201_s24] sm:$0xff]  ;;  %1015 = vmatprep.subr.msk.mxu0 %vm459_vm1, %v361_v1  ;;  %1065 = vmatprep.subr.msk.mxu1 %vm459_vm1, %v361_v1  ;;  %v222_v10 = vld [vmem:[%s1201_s24 + $0x18] sm:$0xff]  ;;  %v224_v12 = vld [vmem:[%s1201_s24 + $0x28] sm:$0xff]  ;;  %vm689_vm3 = vcmask 261120   ;;  %s1155_s6 = smov [#allocation2]   ;;  %vm760_vm4 = vcmask 253952  }
  0x15   : > { %v1211_v3 = vld [vmem:[%s1473_s1] ss:$0 sm:$0xff]  ;;  %1016 = vmatpush3.msk.msra.mxu0 %vm459_vm1, %v361_v1  ;;  %1066 = vmatpush3.msk.msra.mxu1 %vm459_vm1, %v361_v1  ;;  %v225_v16 = vld [vmem:[%s1201_s24 + $0x30] sm:$0xff]  ;;  %v226_v17 = vld [vmem:[%s1201_s24 + $0x38] sm:$0xff]  ;;  %s873_s7 = sshll.u32 %s1155_s6, 4  ;;  %p1075_p5 = scmp.eq.s32.totalorder %s1193_s19, 1  ;;  %s874_s7 = int_to_ptr.vmem [resolvable:$true] %s873_s7 }
  0x16   : > { %v258_v4 = vmul.f32 %v1211_v3, %v219_v2  ;;  %v1217_v5 = vld [vmem:[%s1474_s2] ss:$0 sm:$0xff]  ;;  %v259_v8 = vmul.f32 %v1211_v3, %v220_v6  ;;  %v260_v9 = vmul.f32 %v1211_v3, %v221_v7  ;;  %v261_v14 = vmul.f32 %v1211_v3, %v222_v10  ;;  %v228_v29 = vld [vmem:[%s1201_s24 + $0x48] sm:$0xff]  ;;  %v229_v33 = vld [vmem:[%s1201_s24 + $0x50] sm:$0xff]  ;;  %s1156_s8 = smov [#allocation4]   ;;  %s1090_s10 = scalar_lea.vmem %s874_s7, 16 }
  0x17   : > { %v223_v11 = vld [vmem:[%s1201_s24 + $0x20] sm:$0xff]  ;;  %v263_v20 = vmul.f32 %v1211_v3, %v224_v12  ;;  %v264_v21 = vmul.f32 %v1211_v3, %v225_v16  ;;  %v265_v25 = vmul.f32 %v1211_v3, %v226_v17  ;;  %v267_v37 = vmul.f32 %v1211_v3, %v228_v29  ;;  %v230_v38 = vld [vmem:[%s1201_s24 + $0x58] sm:$0xff]  ;;  %v236_v42 = vld [vmem:[%s1201_s24 + $0x88] sm:$0xff]  ;;  %s884_s9 = sshll.u32 %s1156_s8, 4  ;;  %p1091_p6 = scmp.ne.s32.totalorder %s874_s7, %s1090_s10  ;;  %s885_s9 = int_to_ptr.vmem [resolvable:$true] %s884_s9 }
  0x18   : > { %v297_v13 = vadd.f32 %v1217_v5, %v258_v4  ;;  %v262_v15 = vmul.f32 %v1211_v3, %v223_v11  ;;  %v298_v18 = vadd.f32 %v1217_v5, %v259_v8  ;;  %v299_v19 = vadd.f32 %v1217_v5, %v260_v9  ;;  %v227_v26 = vld [vmem:[%s1201_s24 + $0x40] sm:$0xff]  ;;  %v237_v43 = vld [vmem:[%s1201_s24 + $0x90] sm:$0xff]  ;;  %v238_v46 = vld [vmem:[%s1201_s24 + $0x98] sm:$0xff]  ;;  %s1096_s11 = scalar_lea.vmem %s874_s7, 32  ;;  %p1097_p9 = scmp.lt.s32.totalorder %s874_s7, %s874_s7 }
  0x19   : > { %v300_v23 = vadd.f32 %v1217_v5, %v261_v14  ;;  %v302_v31 = vadd.f32 %v1217_v5, %v263_v20  ;;  %v266_v32 = vmul.f32 %v1211_v3, %v227_v26  ;;  %v303_v35 = vadd.f32 %v1217_v5, %v264_v21  ;;  %v235_v39 = vld [vmem:[%s1201_s24 + $0x80] sm:$0xff]  ;;  %v240_v52 = vld [vmem:[%s1201_s24 + $0xa8] sm:$0xff]  ;;  %v241_v57 = vld [vmem:[%s1201_s24 + $0xb0] sm:$0xff]  ;;  %p1092_p7 = pnand %p1091_p6, %p1075_p5  ;;  %p1098_p10 = scmp.lt.s32.totalorder %s1096_s11, %s1090_s10 }
  0x1a   : > { %v329_v22 = vmax.f32 %v297_v13, 0.0  ;;  %v301_v24 = vadd.f32 %v1217_v5, %v262_v15  ;;  %v330_v27 = vmax.f32 %v298_v18, 0.0  ;;  %v331_v28 = vmax.f32 %v299_v19, 0.0  ;;  %v231_v41 = vld [vmem:[%s1201_s24 + $0x60] sm:$0xff]  ;;  %v232_v63 = vld [vmem:[%s1201_s24 + $0x68] sm:$0xff]  ;;  %v233_v0 = vld [vmem:[%s1201_s24 + $0x70] sm:$0xff] }
  0x1b   : > { %v332_v30 = vmax.f32 %v300_v23, 0.0  ;;  %v304_v36 = vadd.f32 %v1217_v5, %v265_v25  ;;  %v268_v40 = vmul.f32 %v1211_v3, %v229_v33  ;;  %v334_v44 = vmax.f32 %v302_v31, 0.0  ;;  %v239_v47 = vld [vmem:[%s1201_s24 + $0xa0] sm:$0xff]  ;;  %v242_v10 = vld [vmem:[%s1201_s24 + $0xb8] sm:$0xff]  ;;  %p1093_p8 = pneg %p1092_p7  ;;  %p1099_p11 = por %p1098_p10, %p1097_p9 }
  0x1c   : > { %1017 = vmatprep.mubr.msk.f32.mxu0 %vm362_vm2, %v329_v22  ;;  %v333_v34 = vmax.f32 %v301_v24, 0.0  ;;  %v305_v45 = vadd.f32 %v1217_v5, %v266_v32  ;;  %v335_v48 = vmax.f32 %v303_v35, 0.0  ;;  %v269_v50 = vmul.f32 %v1211_v3, %v230_v38  ;;  %v243_v13 = vld [vmem:[%s1201_s24 + $0xc0] sm:$0xff]  ;;  %v234_v19 = vld [vmem:[%s1201_s24 + $0x78] sm:$0xff] }
  0x1d   : > { %1018 = vmatmul.mubr.msk.f32.vlgmr.msra.gmra.mxu0 %vm362_vm2, %v330_v27  ;;  %v336_v49 = vmax.f32 %v304_v36, 0.0  ;;  %v274_v51 = vmul.f32 %v1211_v3, %v235_v39  ;;  %v306_v53 = vadd.f32 %v1217_v5, %v267_v37  ;;  %v270_v54 = vmul.f32 %v1211_v3, %v231_v41  ;;  %v244_v27 = vld [vmem:[%s1201_s24 + $0xc8] sm:$0xff]  ;;  %v247_v41 = vld [vmem:[%s1201_s24 + $0xe0] sm:$0xff]  ;;  %p1100_p12 = pnand %p1099_p11, %p1093_p8 }
  0x1e   : > { %1020 = vmatprep.mubr.msk.f32.mxu0 %vm362_vm2, %v331_v28  ;;  %v275_v55 = vmul.f32 %v1211_v3, %v236_v42  ;;  %v276_v56 = vmul.f32 %v1211_v3, %v237_v43  ;;  %v307_v58 = vadd.f32 %v1217_v5, %v268_v40  ;;  %v277_v60 = vmul.f32 %v1211_v3, %v238_v46  ;;  %v245_v28 = vld [vmem:[%s1201_s24 + $0xd0] sm:$0xff]  ;;  %v246_v40 = vld [vmem:[%s1201_s24 + $0xd8] sm:$0xff] }
  0x1f   : > { %v313_v59 = vadd.f32 %v1217_v5, %v274_v51  ;;  %v278_v61 = vmul.f32 %v1211_v3, %v239_v47  ;;  %v337_v62 = vmax.f32 %v305_v45, 0.0  ;;  %v279_v4 = vmul.f32 %v1211_v3, %v240_v52  ;;  %v248_v51 = vld [vmem:[%s1201_s24 + $0xe8] sm:$0xff]  ;;  %v249_v52 = vld [vmem:[%s1201_s24 + $0xf0] sm:$0xff] }
  0x20   : > { %v314_v1 = vadd.f32 %v1217_v5, %v275_v55  ;;  %v315_v2 = vadd.f32 %v1217_v5, %v276_v56  ;;  %v316_v7 = vadd.f32 %v1217_v5, %v277_v60  ;;  %v280_v9 = vmul.f32 %v1211_v3, %v241_v57  ;;  %v250_v60 = vld [vmem:[%s1201_s24 + $0xf8] sm:$0xff] }
  0x21   : > { %1021 = vmatmul.mubr.msk.f32.gmra.mxu0 %vm362_vm2, %v332_v30  ;;  %v345_v6 = vmax.f32 %v313_v59, 0.0  ;;  %v317_v8 = vadd.f32 %v1217_v5, %v278_v61  ;;  %v308_v14 = vadd.f32 %v1217_v5, %v269_v50  ;;  %v309_v15 = vadd.f32 %v1217_v5, %v270_v54 }
  0x22   : > { %1023 = vmatprep.mubr.msk.f32.mxu0 %vm362_vm2, %v333_v34  ;;  %v346_v11 = vmax.f32 %v314_v1, 0.0  ;;  %v347_v12 = vmax.f32 %v315_v2, 0.0  ;;  %v271_v16 = vmul.f32 %v1211_v3, %v232_v63  ;;  %v272_v17 = vmul.f32 %v1211_v3, %v233_v0 }
  0x23   : > { %1041 = vmatprep.mubr.msk.f32.mxu1 %vm362_vm2, %v345_v6  ;;  %v338_v18 = vmax.f32 %v306_v53, 0.0  ;;  %v348_v20 = vmax.f32 %v316_v7, 0.0  ;;  %v318_v21 = vadd.f32 %v1217_v5, %v279_v4  ;;  %v281_v22 = vmul.f32 %v1211_v3, %v242_v10 }
  0x24   : > { %1042 = vmatmul.mubr.msk.f32.vlgmr.msra.gmra.mxu1 %vm362_vm2, %v346_v11  ;;  %v339_v23 = vmax.f32 %v307_v58, 0.0  ;;  %v349_v24 = vmax.f32 %v317_v8, 0.0  ;;  %v319_v25 = vadd.f32 %v1217_v5, %v280_v9  ;;  %v282_v26 = vmul.f32 %v1211_v3, %v243_v13 }
  0x25   : > { %1024 = vmatmul.mubr.msk.f32.gmra.mxu0 %vm362_vm2, %v334_v44  ;;  %1044 = vmatprep.mubr.msk.f32.mxu1 %vm362_vm2, %v347_v12  ;;  %v310_v29 = vadd.f32 %v1217_v5, %v271_v16  ;;  %v311_v30 = vadd.f32 %v1217_v5, %v272_v17  ;;  %v273_v31 = vmul.f32 %v1211_v3, %v234_v19  ;;  %v340_v32 = vmax.f32 %v308_v14, 0.0 }
  0x26   : > { %1026 = vmatprep.mubr.msk.f32.mxu0 %vm362_vm2, %v335_v48  ;;  %v350_v33 = vmax.f32 %v318_v21, 0.0  ;;  %v320_v34 = vadd.f32 %v1217_v5, %v281_v22  ;;  %v283_v35 = vmul.f32 %v1211_v3, %v244_v27  ;;  %v341_v36 = vmax.f32 %v309_v15, 0.0 }
  0x27   : > { %v351_v37 = vmax.f32 %v319_v25, 0.0  ;;  %v321_v38 = vadd.f32 %v1217_v5, %v282_v26  ;;  %v284_v39 = vmul.f32 %v1211_v3, %v245_v28  ;;  %v312_v42 = vadd.f32 %v1217_v5, %v273_v31 }
  0x28   : > { %1045 = vmatmul.mubr.msk.f32.gmra.mxu1 %vm362_vm2, %v348_v20  ;;  %v342_v43 = vmax.f32 %v310_v29, 0.0  ;;  %v352_v44 = vmax.f32 %v320_v34, 0.0  ;;  %v322_v45 = vadd.f32 %v1217_v5, %v283_v35  ;;  %v285_v46 = vmul.f32 %v1211_v3, %v246_v40 }
  0x29   : > { %1027 = vmatmul.mubr.msk.f32.gmra.mxu0 %vm362_vm2, %v336_v49  ;;  %1047 = vmatprep.mubr.msk.f32.mxu1 %vm362_vm2, %v349_v24  ;;  %v343_v47 = vmax.f32 %v311_v30, 0.0  ;;  %v353_v48 = vmax.f32 %v321_v38, 0.0  ;;  %v323_v49 = vadd.f32 %v1217_v5, %v284_v39  ;;  %v286_v50 = vmul.f32 %v1211_v3, %v247_v41 }
  0x2a   : > { %1029 = vmatprep.mubr.msk.f32.mxu0 %vm362_vm2, %v337_v62  ;;  %v344_v53 = vmax.f32 %v312_v42, 0.0  ;;  %v354_v54 = vmax.f32 %v322_v45, 0.0  ;;  %v324_v55 = vadd.f32 %v1217_v5, %v285_v46  ;;  %v287_v56 = vmul.f32 %v1211_v3, %v248_v51 }
  0x2b   : > { %v355_v57 = vmax.f32 %v323_v49, 0.0  ;;  %v325_v58 = vadd.f32 %v1217_v5, %v286_v50  ;;  %v288_v59 = vmul.f32 %v1211_v3, %v249_v52  ;;  %v289_v63 = vmul.f32 %v1211_v3, %v250_v60 }
  0x2c   : > { %1048 = vmatmul.mubr.msk.f32.gmra.mxu1 %vm362_vm2, %v350_v33  ;;  %v356_v61 = vmax.f32 %v324_v55, 0.0  ;;  %v326_v62 = vadd.f32 %v1217_v5, %v287_v56 }
  0x2d   : > { %1030 = vmatmul.mubr.msk.f32.gmra.mxu0 %vm362_vm2, %v338_v18  ;;  %1050 = vmatprep.mubr.msk.f32.mxu1 %vm362_vm2, %v351_v37  ;;  %v357_v0 = vmax.f32 %v325_v58, 0.0  ;;  %v327_v1 = vadd.f32 %v1217_v5, %v288_v59  ;;  %v328_v4 = vadd.f32 %v1217_v5, %v289_v63 }
  0x2e   : > { %1032 = vmatprep.mubr.msk.f32.mxu0 %vm362_vm2, %v339_v23  ;;  %v358_v2 = vmax.f32 %v326_v62, 0.0 }
  0x2f   : > { %v359_v6 = vmax.f32 %v327_v1, 0.0  ;;  %v360_v7 = vmax.f32 %v328_v4, 0.0 }
  0x30   : > { %1051 = vmatmul.mubr.msk.f32.gmra.mxu1 %vm362_vm2, %v352_v44 }
  0x31   : > { %1033 = vmatmul.mubr.msk.f32.gmra.mxu0 %vm362_vm2, %v340_v32  ;;  %1053 = vmatprep.mubr.msk.f32.mxu1 %vm362_vm2, %v353_v48 }
  0x32   : > { %1035 = vmatprep.mubr.msk.f32.mxu0 %vm362_vm2, %v341_v36 }
  0x34   : > { %1054 = vmatmul.mubr.msk.f32.gmra.mxu1 %vm362_vm2, %v354_v54 }
  0x35   : > { %1036 = vmatmul.mubr.msk.f32.gmra.mxu0 %vm362_vm2, %v342_v43  ;;  %1056 = vmatprep.mubr.msk.f32.mxu1 %vm362_vm2, %v355_v57 }
  0x36   : > { %1038 = vmatprep.mubr.msk.f32.mxu0 %vm362_vm2, %v343_v47 }
  0x38   : > { %1057 = vmatmul.mubr.msk.f32.gmra.mxu1 %vm362_vm2, %v356_v61 }
  0x39   : > { %1039 = vmatmul.mubr.msk.f32.gmra.mxu0 %vm362_vm2, %v344_v53  ;;  %1059 = vmatprep.mubr.msk.f32.mxu1 %vm362_vm2, %v357_v0 }
  0x3c   : > { %1060 = vmatmul.mubr.msk.f32.gmra.mxu1 %vm362_vm2, %v358_v2 }
  0x3d   : > { %1062 = vmatprep.mubr.msk.f32.mxu1 %vm362_vm2, %v359_v6 }
  0x40   : > { %1063 = vmatmul.mubr.msk.f32.gmra.mxu1 %vm362_vm2, %v360_v7 }
  0xdd   : > { %v1019_v3 = vpop.f32.mrf.mxu0 }
  0xde   : > { %v764_v9 = vmul.f32 %v1019_v3, %v1019_v3  ;;  %v691_v5 = vsel %vm689_vm3, %v1019_v3, 0.0 }
  0xdf   : > { %v529_v8 = vpop.f32.mrf.mxu0 }
  0xe0   : > { %v690_v10 = vsel %vm689_vm3, %v529_v8, 0.0  ;;  %v763_v11 = vmul.f32 %v529_v8, %v529_v8  ;;  %v796_v16 = vsel %vm689_vm3, %v764_v9, 0.0 }
  0xe1   : > { %v1022_v12 = vpop.f32.mrf.mxu0  ;;  %v692_v14 = vadd.f32 %v691_v5, %v690_v10 }
  0xe2   : > { %v795_v13 = vsel %vm689_vm3, %v763_v11, 0.0  ;;  %v766_v17 = vmul.f32 %v1022_v12, %v1022_v12  ;;  %v695_v23 = vsel %vm689_vm3, %v1022_v12, 0.0 }
  0xe3   : > { %v539_v15 = vpop.f32.mrf.mxu0  ;;  %v797_v20 = vadd.f32 %v796_v16, %v795_v13 }
  0xe4   : > { %v693_v18 = vsel %vm689_vm3, %v539_v15, 0.0  ;;  %v765_v19 = vmul.f32 %v539_v15, %v539_v15  ;;  %v800_v28 = vsel %vm689_vm3, %v766_v17, 0.0  ;;  %v1354_v35 = vpop.f32.mrf.mxu1 }
  0xe5   : > { %v694_v21 = vadd.f32 %v693_v18, %v692_v14  ;;  %v1025_v22 = vpop.f32.mrf.mxu0 }
  0xe6   : > { %v798_v24 = vsel %vm689_vm3, %v765_v19, 0.0  ;;  %v768_v29 = vmul.f32 %v1025_v22, %v1025_v22  ;;  %v699_v36 = vsel %vm689_vm3, %v1025_v22, 0.0  ;;  %v1358_v41 = vpop.f32.mrf.mxu1 }
  0xe7   : > { %v799_v25 = vadd.f32 %v798_v24, %v797_v20  ;;  %v549_v26 = vpop.f32.mrf.mxu0  ;;  %v696_v27 = vadd.f32 %v695_v23, %v694_v21 }
  0xe8   : > { %v697_v30 = vsel %vm689_vm3, %v549_v26, 0.0  ;;  %v767_v31 = vmul.f32 %v549_v26, %v549_v26  ;;  %v804_v42 = vsel %vm689_vm3, %v768_v29, 0.0  ;;  %v1362_v49 = vpop.f32.mrf.mxu1 }
  0xe9   : > { %v698_v32 = vadd.f32 %v697_v30, %v696_v27  ;;  %v801_v33 = vadd.f32 %v800_v28, %v799_v25  ;;  %v1028_v34 = vpop.f32.mrf.mxu0 }
  0xea   : > { %v802_v37 = vsel %vm689_vm3, %v767_v31, 0.0  ;;  %v770_v43 = vmul.f32 %v1028_v34, %v1028_v34  ;;  %v703_v50 = vsel %vm689_vm3, %v1028_v34, 0.0  ;;  %v1366_v55 = vpop.f32.mrf.mxu1 }
  0xeb   : > { %v803_v38 = vadd.f32 %v802_v37, %v801_v33  ;;  %v559_v39 = vpop.f32.mrf.mxu0  ;;  %v700_v40 = vadd.f32 %v699_v36, %v698_v32 }
  0xec   : > { %v701_v44 = vsel %vm689_vm3, %v559_v39, 0.0  ;;  %v769_v45 = vmul.f32 %v559_v39, %v559_v39  ;;  %v808_v56 = vsel %vm689_vm3, %v770_v43, 0.0  ;;  %v1370_v63 = vpop.f32.mrf.mxu1  ;;  %v779_v43 = vmul.f32 %v1358_v41, %v1358_v41 }
  0xed   : > { %v702_v46 = vadd.f32 %v701_v44, %v700_v40  ;;  %v805_v47 = vadd.f32 %v804_v42, %v803_v38  ;;  %v1031_v48 = vpop.f32.mrf.mxu0 }
  0xee   : > { %v806_v51 = vsel %vm689_vm3, %v769_v45, 0.0  ;;  %v772_v57 = vmul.f32 %v1031_v48, %v1031_v48  ;;  %v707_v0 = vsel %vm689_vm3, %v1031_v48, 0.0  ;;  %v1374_v7 = vpop.f32.mrf.mxu1  ;;  %v780_v48 = vmul.f32 %v1354_v35, %v1354_v35 }
  0xef   : > { %v807_v52 = vadd.f32 %v806_v51, %v805_v47  ;;  %v569_v53 = vpop.f32.mrf.mxu0  ;;  %v704_v54 = vadd.f32 %v703_v50, %v702_v46  ;;  %v721_v50 = vsel %vm689_vm3, %v1358_v41, 0.0  ;;  %v725_v41 = vsel %vm689_vm3, %v1366_v55, 0.0 }
  0xf0   : > { %v705_v58 = vsel %vm689_vm3, %v569_v53, 0.0  ;;  %v771_v59 = vmul.f32 %v569_v53, %v569_v53  ;;  %v812_v3 = vsel %vm689_vm3, %v772_v57, 0.0  ;;  %v1378_v13 = vpop.f32.mrf.mxu1  ;;  %v723_v53 = vsel %vm689_vm3, %v1354_v35, 0.0 }
  0xf1   : > { %v706_v60 = vadd.f32 %v705_v58, %v704_v54  ;;  %v809_v61 = vadd.f32 %v808_v56, %v807_v52  ;;  %v1034_v62 = vpop.f32.mrf.mxu0  ;;  %v826_v54 = vsel %vm689_vm3, %v779_v43, 0.0  ;;  %v781_v56 = vmul.f32 %v1366_v55, %v1366_v55 }
  0xf2   : > { %v810_v1 = vsel %vm689_vm3, %v771_v59, 0.0  ;;  %v774_v8 = vmul.f32 %v1034_v62, %v1034_v62  ;;  %v711_v14 = vsel %vm689_vm3, %v1034_v62, 0.0  ;;  %v639_v19 = vpop.f32.mrf.mxu1  ;;  %v727_v35 = vsel %vm689_vm3, %v1362_v49, 0.0 }
  0xf3   : > { %v811_v2 = vadd.f32 %v810_v1, %v809_v61  ;;  %v579_v4 = vpop.f32.mrf.mxu0  ;;  %v708_v6 = vadd.f32 %v707_v0, %v706_v60  ;;  %v828_v60 = vsel %vm689_vm3, %v780_v48, 0.0  ;;  %v782_v61 = vmul.f32 %v1362_v49, %v1362_v49 }
  0xf4   : > { %v709_v9 = vsel %vm689_vm3, %v579_v4, 0.0  ;;  %v773_v10 = vmul.f32 %v579_v4, %v579_v4  ;;  %v816_v20 = vsel %vm689_vm3, %v774_v8, 0.0  ;;  %v1055_v32 = vpop.f32.mrf.mxu1  ;;  %v830_v1 = vsel %vm689_vm3, %v781_v56, 0.0 }
  0xf5   : > { %v710_v11 = vadd.f32 %v709_v9, %v708_v6  ;;  %v813_v12 = vadd.f32 %v812_v3, %v811_v2  ;;  %v1037_v5 = vpop.f32.mrf.mxu0  ;;  %v783_v2 = vmul.f32 %v1374_v7, %v1374_v7  ;;  %v832_v8 = vsel %vm689_vm3, %v782_v61, 0.0 }
  0xf6   : > { %v814_v15 = vsel %vm689_vm3, %v773_v10, 0.0  ;;  %v776_v21 = vmul.f32 %v1037_v5, %v1037_v5  ;;  %v715_v27 = vsel %vm689_vm3, %v1037_v5, 0.0  ;;  %v649_v46 = vpop.f32.mrf.mxu1  ;;  %v784_v9 = vmul.f32 %v1370_v63, %v1370_v63 }
  0xf7   : > { %v815_v16 = vadd.f32 %v814_v15, %v813_v12  ;;  %v589_v17 = vpop.f32.mrf.mxu0  ;;  %v712_v18 = vadd.f32 %v711_v14, %v710_v11  ;;  %v729_v55 = vsel %vm689_vm3, %v1374_v7, 0.0  ;;  %v731_v49 = vsel %vm689_vm3, %v1370_v63, 0.0 }
  0xf8   : > { %v713_v22 = vsel %vm689_vm3, %v589_v17, 0.0  ;;  %v775_v23 = vmul.f32 %v589_v17, %v589_v17  ;;  %v820_v33 = vsel %vm689_vm3, %v776_v21, 0.0  ;;  %v1058_v59 = vpop.f32.mrf.mxu1  ;;  %v834_v12 = vsel %vm689_vm3, %v783_v2, 0.0 }
  0xf9   : > { %v714_v24 = vadd.f32 %v713_v22, %v712_v18  ;;  %v817_v25 = vadd.f32 %v816_v20, %v815_v16  ;;  %v1040_v26 = vpop.f32.mrf.mxu0  ;;  %v785_v5 = vmul.f32 %v639_v19, %v639_v19  ;;  %v836_v17 = vsel %vm689_vm3, %v784_v9, 0.0 }
  0xfa   : > { %v818_v28 = vsel %vm689_vm3, %v775_v23, 0.0  ;;  %v778_v34 = vmul.f32 %v1040_v26, %v1040_v26  ;;  %v719_v40 = vsel %vm689_vm3, %v1040_v26, 0.0  ;;  %v659_v3 = vpop.f32.mrf.mxu1  ;;  %v786_v18 = vmul.f32 %v1378_v13, %v1378_v13 }
  0xfb   : > { %v819_v29 = vadd.f32 %v818_v28, %v817_v25  ;;  %v599_v30 = vpop.f32.mrf.mxu0  ;;  %v716_v31 = vadd.f32 %v715_v27, %v714_v24  ;;  %v733_v20 = vsel %vm689_vm3, %v639_v19, 0.0  ;;  %v735_v22 = vsel %vm689_vm3, %v1378_v13, 0.0 }
  0xfc   : > { %v717_v36 = vsel %vm689_vm3, %v599_v30, 0.0  ;;  %v777_v37 = vmul.f32 %v599_v30, %v599_v30  ;;  %v824_v47 = vsel %vm689_vm3, %v778_v34, 0.0  ;;  %v1061_v16 = vpop.f32.mrf.mxu1  ;;  %v838_v63 = vsel %vm689_vm3, %v785_v5, 0.0 }
  0xfd   : > { %v718_v38 = vadd.f32 %v717_v36, %v716_v31  ;;  %v821_v39 = vadd.f32 %v820_v33, %v819_v29  ;;  %v787_v23 = vmul.f32 %v649_v46, %v649_v46  ;;  %v840_v27 = vsel %vm689_vm3, %v786_v18, 0.0 }
  0xfe   : > { %v822_v42 = vsel %vm689_vm3, %v777_v37, 0.0  ;;  %v669_v26 = vpop.f32.mrf.mxu1  ;;  %v788_v28 = vmul.f32 %v1055_v32, %v1055_v32  ;;  %v737_v29 = vsel %vm689_vm3, %v649_v46, 0.0  ;;  %v739_v19 = vsel %vm689_vm3, %v1055_v32, 0.0 }
  0xff   : > { %v720_v44 = vadd.f32 %v719_v40, %v718_v38  ;;  %v823_v45 = vadd.f32 %v822_v42, %v821_v39  ;;  %v842_v33 = vsel %vm689_vm3, %v787_v23, 0.0  ;;  %v789_v34 = vmul.f32 %v659_v3, %v659_v3 }
 0x100   : > { %v1064_v37 = vpop.f32.mrf.mxu1  ;;  %v844_v38 = vsel %vm689_vm3, %v788_v28, 0.0  ;;  %v790_v39 = vmul.f32 %v1058_v59, %v1058_v59  ;;  %v741_v40 = vsel %vm689_vm3, %v659_v3, 0.0  ;;  %v791_v46 = vmul.f32 %v669_v26, %v669_v26 }
 0x101   : > { %v825_v51 = vadd.f32 %v824_v47, %v823_v45  ;;  %v722_v52 = vadd.f32 %v721_v50, %v720_v44  ;;  %v743_v44 = vsel %vm689_vm3, %v1058_v59, 0.0  ;;  %v846_v45 = vsel %vm689_vm3, %v789_v34, 0.0 }
 0x102   : > { %v679_v48 = vpop.f32.mrf.mxu1  ;;  %v848_v50 = vsel %vm689_vm3, %v790_v39, 0.0  ;;  %v747_v56 = vsel %vm689_vm3, %v1061_v16, 0.0 }
 0x103   : > { %v827_v57 = vadd.f32 %v826_v54, %v825_v51  ;;  %v724_v58 = vadd.f32 %v723_v53, %v722_v52  ;;  %v792_v51 = vmul.f32 %v1061_v16, %v1061_v16  ;;  %v745_v52 = vsel %vm689_vm3, %v669_v26, 0.0  ;;  %v688_v16 = vld [vmem:[#allocation2] sm:$0x1] }
 0x105   : > { %v726_v62 = vadd.f32 %v725_v41, %v724_v58  ;;  %v829_v0 = vadd.f32 %v828_v60, %v827_v57  ;;  %v850_v57 = vsel %vm689_vm3, %v791_v46, 0.0  ;;  %v793_v58 = vmul.f32 %v679_v48, %v679_v48 }
 0x106   : > { %v852_v61 = vsel %vm689_vm3, %v792_v51, 0.0  ;;  %v794_v41 = vmul.f32 %v1064_v37, %v1064_v37 }
 0x107   : > { %v831_v4 = vadd.f32 %v830_v1, %v829_v0  ;;  %v728_v6 = vadd.f32 %v727_v35, %v726_v62  ;;  %v749_v62 = vsel %vm689_vm3, %v679_v48, 0.0  ;;  %v751_v1 = vsel %vm689_vm3, %v1064_v37, 0.0 }
 0x108   : > { %v854_v2 = vsel %vm689_vm3, %v793_v58, 0.0  ;;  %v856_v3 = vsel %vm689_vm3, %v794_v41, 0.0 }
 0x109   : > { %v730_v10 = vadd.f32 %v729_v55, %v728_v6  ;;  %v833_v11 = vadd.f32 %v832_v8, %v831_v4 }
 0x10b   : > { %v835_v14 = vadd.f32 %v834_v12, %v833_v11  ;;  %v732_v15 = vadd.f32 %v731_v49, %v730_v10 }
 0x10d   : > { %v734_v21 = vadd.f32 %v733_v20, %v732_v15  ;;  %v837_v7 = vadd.f32 %v836_v17, %v835_v14  ;;  %v762_v20 = vld [vmem:[#allocation4] sm:$0x1] }
 0x10f   : > { %v839_v24 = vadd.f32 %v838_v63, %v837_v7  ;;  %v736_v25 = vadd.f32 %v735_v22, %v734_v21 }
 0x111   : > { %v738_v30 = vadd.f32 %v737_v29, %v736_v25  ;;  %v841_v31 = vadd.f32 %v840_v27, %v839_v24 }
 0x113   : > { %v843_v36 = vadd.f32 %v842_v33, %v841_v31  ;;  %v740_v13 = vadd.f32 %v739_v19, %v738_v30 }
 0x115   : > { %v742_v42 = vadd.f32 %v741_v40, %v740_v13  ;;  %v845_v43 = vadd.f32 %v844_v38, %v843_v36 }
 0x117   : > { %v847_v47 = vadd.f32 %v846_v45, %v845_v43  ;;  %v744_v32 = vadd.f32 %v743_v44, %v742_v42 }
 0x119   : > { %v746_v53 = vadd.f32 %v745_v52, %v744_v32  ;;  %v849_v54 = vadd.f32 %v848_v50, %v847_v47 }
 0x11b   : > { %v851_v60 = vadd.f32 %v850_v57, %v849_v54  ;;  %v748_v59 = vadd.f32 %v747_v56, %v746_v53 }
 0x11d   : > { %v750_v0 = vadd.f32 %v749_v62, %v748_v59  ;;  %v853_v35 = vadd.f32 %v852_v61, %v851_v60 }
 0x11f   : > { %v752_v4 = vadd.f32 %v751_v1, %v750_v0  ;;  %v855_v6 = vadd.f32 %v854_v2, %v853_v35 }
 0x121   : > { %v753_v8 = vrot.slane %v752_v4, 4  ;;  %v857_v9 = vadd.f32 %v856_v3, %v855_v6 }
 0x123   : > { %v754_v55 = vadd.f32 %v753_v8, %v752_v4  ;;  %v858_v10 = vrot.slane %v857_v9, 4 }
 0x125   : > { %v755_v11 = vrot.slane %v754_v55, 2  ;;  %v859_v49 = vadd.f32 %v858_v10, %v857_v9 }
 0x127   : > { %v756_v12 = vadd.f32 %v755_v11, %v754_v55  ;;  %v860_v5 = vrot.slane %v859_v49, 2 }
 0x129   : > { %v757_v14 = vrot.slane %v756_v12, 1  ;;  %v861_v15 = vadd.f32 %v860_v5, %v859_v49 }
 0x12b   : > { %v758_v17 = vadd.f32 %v757_v14, %v756_v12  ;;  %v862_v18 = vrot.slane %v861_v15, 1 }
 0x12d   : > { %v759_v21 = vadd.f32 %v758_v17, %v688_v16  ;;  %v863_v7 = vadd.f32 %v862_v18, %v861_v15 }
 0x12f   : > { %761 = vst.msk [vmem:[#allocation2] sm:$0x1] %vm760_vm4, %v759_v21  ;;  %v864_v22 = vadd.f32 %v863_v7, %v762_v20 }
 0x130   : > { %1103 = shalt.err (!%p1100_p12)
}
 0x131   : > { %1068 = dma.vmem_to_hbm [thread:$0]  (%p1075_p5), %s874_s7, 16, %s1476_s4, [#allocation3]   ;;  %865 = vst.msk [vmem:[#allocation4] sm:$0x1] %vm760_vm4, %v864_v22 }
 0x132   : > { %s1114_s14 = scalar_lea.vmem %s885_s9, 16  ;;  %s1120_s15 = scalar_lea.vmem %s885_s9, 32 }
 0x133   : > { %p1115_p13 = scmp.ne.s32.totalorder %s885_s9, %s1114_s14  ;;  %p1121_p2 = scmp.lt.s32.totalorder %s885_s9, %s885_s9 }
 0x134   : > { %p1122_p3 = scmp.lt.s32.totalorder %s1120_s15, %s1114_s14 }
 0x135   : > { %p1116_p0 = pnand %p1115_p13, %p1075_p5 }
 0x136   : > { %p1123_p4 = por %p1122_p3, %p1121_p2 }
 0x137   : > { %p1117_p1 = pneg %p1116_p0 }
 0x139   : > { %p1124_p6 = pnand %p1123_p4, %p1117_p1 }
 0x13b   : > { %1127 = shalt.err (!%p1124_p6)
}
 0x13c   : > { %1070 = dma.vmem_to_hbm [thread:$0]  (%p1075_p5), %s885_s9, 16, %s1477_s5, [#allocation5]  }
 0x13d   : > { %1143 = dma.done.wait (%p1075_p5), [#allocation3], 16  }
 0x13e   : > { %1145 = vsyncadd (%p1075_p5), [#allocation3], 4294967280 }
 0x13f   : > { %1147 = dma.done.wait (%p1075_p5), [#allocation5], 16  }
 0x140   : > { %1149 = vsyncadd (%p1075_p5), [#allocation5], 4294967280 }
 0x141 PF: > { %s18_s18 = sadd.s32 1, %s1152_s18  }
 0x142   : > { %p15_p7 = scmp.ge.s32.totalorder %s18_s18, 4  }
 0x144   :  { %17 = sbr.rel (!%p15_p7) target bundleno = 2 (0x2), region = 75 }
 0x149   :  { %901 = vsyncpa [#allocation3], 1 }
 0x14a   :  { %903 = vsyncpa [#allocation3 + $0x1], 1 }
 0x14b   :  { %904 = vsyncpa [#allocation5], 1 }

</bundles_post_ra>
